<compile_context>
chip_gen: v7x
topology: tpu7x:2x2x1
jax: 0.10.0
libtpu: 0.0.40
codegen_flags: <defaults>
</compile_context>

<pallas_src>
import functools

import jax
import jax.numpy as jnp
from jax.experimental import pallas as pl
from jax.experimental.pallas import tpu as pltpu


def tbnn_kernel(x_ref, w1_ref, b1_ref, w2_ref, b2_ref, w3_ref, b3_ref, o_ref,
                *, input_dim, output_dim):
    x = x_ref[...]
    rows = x.shape[0]
    hidden = w1_ref.shape[1]

    # fc1: K == input_dim is tiny (2) -> skip the MXU push/pop round-trip and
    # compute broadcast FMAs on the VPU, bias fused in.
    # TODO(synk): if input_dim ever grows past ~8, switch fc1 back to an MXU dot.
    h = jnp.broadcast_to(b1_ref[...], (rows, hidden))
    for k in range(input_dim):            # static unroll at trace time
        h = h + x[:, k:k + 1] * w1_ref[k:k + 1, :]
    h = jnp.maximum(h, 0.0)

    # fc2 + ReLU on the MXU (hidden x hidden). DEFAULT precision = single bf16
    # MXU pass with f32 accumulation.
    h = jnp.dot(h, w2_ref[...], preferred_element_type=jnp.float32)
    h = jnp.maximum(h + b2_ref[...], 0.0)

    # fc3 on the VPU/XLU: output_dim is tiny, so an MXU dot would waste >98%
    # of the MXU output columns while paying full push cadence. w3 is kept in
    # torch layout [out, hidden] so row j broadcasts directly against h.
    cols = []
    for j in range(output_dim):           # static unroll at trace time
        cols.append(jnp.sum(h * w3_ref[j:j + 1, :], axis=-1, keepdims=True))
    o = jnp.concatenate(cols, axis=-1) + b3_ref[...]
    o_ref[...] = o.astype(o_ref.dtype)


def tbnn_forward(x, w1, b1, w2, b2, w3, b3, *, tile_b=None):
    """TBNN forward: relu(x@w1.T+b1) -> relu(.@w2.T+b2) -> .@w3.T+b3.

    x: [B, input_dim]; w_i: torch layout [out, in]; b_i: [out].
    """
    B, d_in = x.shape
    hidden = w1.shape[0]
    out_dim = w3.shape[0]
    dtype = x.dtype

    # Kernel-side layouts (tiny one-time transposes / reshapes).
    w1t = w1.T                       # [d_in, hidden]   for x @ w1.T
    w2t = w2.T                       # [hidden, hidden] for h @ w2.T
    b1r = b1.reshape(1, hidden)
    b2r = b2.reshape(1, hidden)
    b3r = b3.reshape(1, out_dim)

    # Batch tile: a single grid step for small batches; ~1024-row tiles for
    # large batches so n_tiles >= 2 and both v7x TensorCores get work. No
    # explicit batch padding: the last tile may run out of bounds (reads
    # garbage rows, writes masked) -- safe, nothing reduces over batch.
    if tile_b is None:
        tile_b = B if B <= 1024 else 1024
    tile_b = max(8, min(((tile_b + 7) // 8) * 8, ((B + 7) // 8) * 8))
    n_tiles = pl.cdiv(B, tile_b)

    def full(a):  # whole-array block, constant index -> resident in VMEM
        return pl.BlockSpec(a.shape, lambda *_, nd=a.ndim: (0,) * nd)

    flops = 2 * B * (d_in * hidden + hidden * hidden + hidden * out_dim)
    bytes_accessed = 4 * (B * (d_in + out_dim)
                          + d_in * hidden + hidden * hidden + hidden * out_dim
                          + 2 * hidden + out_dim)

    return pl.pallas_call(
        functools.partial(tbnn_kernel, input_dim=d_in, output_dim=out_dim),
        out_shape=jax.ShapeDtypeStruct((B, out_dim), dtype),
        grid_spec=pltpu.PrefetchScalarGridSpec(
            num_scalar_prefetch=0,
            grid=(n_tiles,),
            in_specs=[
                pl.BlockSpec((tile_b, d_in), lambda i: (i, 0)),  # x: batch-tiled
                full(w1t), full(b1r),                            # weights resident
                full(w2t), full(b2r),
                full(w3), full(b3r),
            ],
            out_specs=pl.BlockSpec((tile_b, out_dim), lambda i: (i, 0)),
        ),
        compiler_params=pltpu.CompilerParams(
            dimension_semantics=("parallel",),  # shard batch over v7x's 2 TCs
        ),
        cost_estimate=pl.CostEstimate(
            flops=flops, transcendentals=0, bytes_accessed=bytes_accessed),
    )(x, w1t, b1r, w2t, b2r, w3, b3r)


def init_linear(key, in_dim, out_dim):
    """nn.Linear-style init (uniform +-1/sqrt(in_dim)), torch layout."""
    kw, kb = jax.random.split(key)
    bound = 1.0 / jnp.sqrt(jnp.float32(in_dim))
    w = jax.random.uniform(kw, (out_dim, in_dim), jnp.float32, -bound, bound)
    b = jax.random.uniform(kb, (out_dim,), jnp.float32, -bound, bound)
    return w, b


if __name__ == "__main__":
    # Van der Pol TBNN: input_dim=2 (state x, y), hidden_dim=64, output_dim=2.
    batch, input_dim, hidden_dim, output_dim = 30, 2, 64, 2

    key = jax.random.PRNGKey(0)
    kx, k1, k2, k3 = jax.random.split(key, 4)

    x = jax.random.normal(kx, (batch, input_dim), jnp.float32)
    w1, b1 = init_linear(k1, input_dim, hidden_dim)
    w2, b2 = init_linear(k2, hidden_dim, hidden_dim)
    w3, b3 = init_linear(k3, hidden_dim, output_dim)

    out = tbnn_forward(x, w1, b1, w2, b2, w3, b3)
    out = jax.block_until_ready(out)

    # Pure-JAX reference (f32, highest-precision matmuls).
    hp = jax.lax.Precision.HIGHEST
    ref = jnp.maximum(jnp.dot(x, w1.T, precision=hp) + b1, 0.0)
    ref = jnp.maximum(jnp.dot(ref, w2.T, precision=hp) + b2, 0.0)
    ref = jnp.dot(ref, w3.T, precision=hp) + b3

    assert out.shape == (batch, output_dim)
    max_err = float(jnp.max(jnp.abs(out - ref)))
    assert jnp.allclose(out, ref, atol=1e-4, rtol=1e-4), max_err

    print("KERNEL_OK")
</pallas_src>

<mosaic_0001>
module attributes {stable_mosaic.version = 11 : i64} {
  func.func @tbnn_kernel(%arg0: i32, %arg1: memref<32x2xf32, #tpu.memory_space<vmem>>, %arg2: memref<2x64xf32, #tpu.memory_space<vmem>>, %arg3: memref<1x64xf32, #tpu.memory_space<vmem>>, %arg4: memref<64x64xf32, #tpu.memory_space<vmem>>, %arg5: memref<1x64xf32, #tpu.memory_space<vmem>>, %arg6: memref<2x64xf32, #tpu.memory_space<vmem>>, %arg7: memref<1x2xf32, #tpu.memory_space<vmem>>, %arg8: memref<32x2xf32, #tpu.memory_space<vmem>>) attributes {dimension_semantics = [#tpu.dimension_semantics<parallel>], iteration_bounds = array<i64: 1>, scalar_prefetch = 0 : i64, scratch_operands = 0 : i64, tpu.core_type = #tpu.core_type<tc>, window_params = [{transform_indices = @transform_0, window_bounds = array<i64: 32, 2>}, {pipeline_mode = #tpu.pipeline_mode<synchronous>, transform_indices = @transform_1, window_bounds = array<i64: 2, 64>}, {pipeline_mode = #tpu.pipeline_mode<synchronous>, transform_indices = @transform_2, window_bounds = array<i64: 1, 64>}, {pipeline_mode = #tpu.pipeline_mode<synchronous>, transform_indices = @transform_3, window_bounds = array<i64: 64, 64>}, {pipeline_mode = #tpu.pipeline_mode<synchronous>, transform_indices = @transform_4, window_bounds = array<i64: 1, 64>}, {pipeline_mode = #tpu.pipeline_mode<synchronous>, transform_indices = @transform_5, window_bounds = array<i64: 2, 64>}, {pipeline_mode = #tpu.pipeline_mode<synchronous>, transform_indices = @transform_6, window_bounds = array<i64: 1, 2>}, {transform_indices = @transform_7, window_bounds = array<i64: 32, 2>}]} {
    %c0 = arith.constant 0 : index
    %c0_0 = arith.constant 0 : index
    %0 = vector.load %arg1[%c0, %c0_0] : memref<32x2xf32, #tpu.memory_space<vmem>>, vector<32x2xf32>
    %c0_1 = arith.constant 0 : index
    %c0_2 = arith.constant 0 : index
    %1 = vector.load %arg3[%c0_1, %c0_2] : memref<1x64xf32, #tpu.memory_space<vmem>>, vector<1x64xf32>
    %2 = vector.shape_cast %1 : vector<1x64xf32> to vector<1x64xf32>
    %3 = vector.broadcast %2 : vector<1x64xf32> to vector<32x64xf32>
    %4 = vector.extract_strided_slice %0 {offsets = [0, 0], sizes = [32, 1], strides = [1, 1]} : vector<32x2xf32> to vector<32x1xf32>
    %c0_3 = arith.constant 0 : index
    %c0_4 = arith.constant 0 : index
    %5 = vector.load %arg2[%c0_3, %c0_4] : memref<2x64xf32, #tpu.memory_space<vmem>>, vector<1x64xf32>
    %6 = vector.broadcast %4 : vector<32x1xf32> to vector<32x64xf32>
    %7 = vector.broadcast %5 : vector<1x64xf32> to vector<32x64xf32>
    %8 = arith.mulf %6, %7 : vector<32x64xf32>
    %9 = arith.addf %3, %8 : vector<32x64xf32>
    %10 = vector.extract_strided_slice %0 {offsets = [0, 1], sizes = [32, 1], strides = [1, 1]} : vector<32x2xf32> to vector<32x1xf32>
    %c1 = arith.constant 1 : index
    %c0_5 = arith.constant 0 : index
    %11 = vector.load %arg2[%c1, %c0_5] : memref<2x64xf32, #tpu.memory_space<vmem>>, vector<1x64xf32>
    %12 = vector.broadcast %10 : vector<32x1xf32> to vector<32x64xf32>
    %13 = vector.broadcast %11 : vector<1x64xf32> to vector<32x64xf32>
    %14 = arith.mulf %12, %13 : vector<32x64xf32>
    %15 = arith.addf %9, %14 : vector<32x64xf32>
    %cst = arith.constant 0.000000e+00 : f32
    %16 = vector.broadcast %cst : f32 to vector<32x64xf32>
    %17 = arith.maximumf %15, %16 : vector<32x64xf32>
    %c0_6 = arith.constant 0 : index
    %c0_7 = arith.constant 0 : index
    %18 = vector.load %arg4[%c0_6, %c0_7] : memref<64x64xf32, #tpu.memory_space<vmem>>, vector<64x64xf32>
    %cst_8 = arith.constant dense<0.000000e+00> : vector<32x64xf32>
    %19 = tpu.matmul %17, %18, %cst_8 {dimension_numbers = #tpu.dot_dimension_numbers<[1], [0], [0], [1], [0, 0, 1, 1], [], []>} : vector<32x64xf32>, vector<64x64xf32>, vector<32x64xf32> -> vector<32x64xf32>
    %c0_9 = arith.constant 0 : index
    %c0_10 = arith.constant 0 : index
    %20 = vector.load %arg5[%c0_9, %c0_10] : memref<1x64xf32, #tpu.memory_space<vmem>>, vector<1x64xf32>
    %21 = vector.broadcast %20 : vector<1x64xf32> to vector<32x64xf32>
    %22 = arith.addf %19, %21 : vector<32x64xf32>
    %cst_11 = arith.constant 0.000000e+00 : f32
    %23 = vector.broadcast %cst_11 : f32 to vector<32x64xf32>
    %24 = arith.maximumf %22, %23 : vector<32x64xf32>
    %c0_12 = arith.constant 0 : index
    %c0_13 = arith.constant 0 : index
    %25 = vector.load %arg6[%c0_12, %c0_13] : memref<2x64xf32, #tpu.memory_space<vmem>>, vector<1x64xf32>
    %26 = vector.broadcast %25 : vector<1x64xf32> to vector<32x64xf32>
    %27 = arith.mulf %24, %26 : vector<32x64xf32>
    %cst_14 = arith.constant dense<0.000000e+00> : vector<32xf32>
    %28 = vector.multi_reduction <add>, %27, %cst_14 [1] : vector<32x64xf32> to vector<32xf32>
    %29 = vector.shape_cast %28 : vector<32xf32> to vector<32x1xf32>
    %c1_15 = arith.constant 1 : index
    %c0_16 = arith.constant 0 : index
    %30 = vector.load %arg6[%c1_15, %c0_16] : memref<2x64xf32, #tpu.memory_space<vmem>>, vector<1x64xf32>
    %31 = vector.broadcast %30 : vector<1x64xf32> to vector<32x64xf32>
    %32 = arith.mulf %24, %31 : vector<32x64xf32>
    %cst_17 = arith.constant dense<0.000000e+00> : vector<32xf32>
    %33 = vector.multi_reduction <add>, %32, %cst_17 [1] : vector<32x64xf32> to vector<32xf32>
    %34 = vector.shape_cast %33 : vector<32xf32> to vector<32x1xf32>
    %35 = tpu.concatenate %29, %34 in 1 : vector<32x1xf32>, vector<32x1xf32> -> vector<32x2xf32>
    %c0_18 = arith.constant 0 : index
    %c0_19 = arith.constant 0 : index
    %36 = vector.load %arg7[%c0_18, %c0_19] : memref<1x2xf32, #tpu.memory_space<vmem>>, vector<1x2xf32>
    %37 = vector.broadcast %36 : vector<1x2xf32> to vector<32x2xf32>
    %38 = arith.addf %35, %37 : vector<32x2xf32>
    %c0_20 = arith.constant 0 : index
    %c0_21 = arith.constant 0 : index
    %39 = vector.load %arg8[%c0_20, %c0_21] : memref<32x2xf32, #tpu.memory_space<vmem>>, vector<32x2xf32>
    tpu.vector_store %arg8[%c0_20, %c0_21], %38 {strides = array<i32>} : memref<32x2xf32, #tpu.memory_space<vmem>>, vector<32x2xf32>,
    return
  }
  func.func @transform_0(%arg0: i32) -> (i32, i32) {
    %c0_i32 = arith.constant 0 : i32
    %c0_i32_0 = arith.constant 0 : i32
    return %arg0, %c0_i32 : i32, i32
  }
  func.func @transform_1(%arg0: i32) -> (i32, i32) {
    %c0_i32 = arith.constant 0 : i32
    %c0_i32_0 = arith.constant 0 : i32
    %c0_i32_1 = arith.constant 0 : i32
    return %c0_i32, %c0_i32_0 : i32, i32
  }
  func.func @transform_2(%arg0: i32) -> (i32, i32) {
    %c0_i32 = arith.constant 0 : i32
    %c0_i32_0 = arith.constant 0 : i32
    %c0_i32_1 = arith.constant 0 : i32
    return %c0_i32, %c0_i32_0 : i32, i32
  }
  func.func @transform_3(%arg0: i32) -> (i32, i32) {
    %c0_i32 = arith.constant 0 : i32
    %c0_i32_0 = arith.constant 0 : i32
    %c0_i32_1 = arith.constant 0 : i32
    return %c0_i32, %c0_i32_0 : i32, i32
  }
  func.func @transform_4(%arg0: i32) -> (i32, i32) {
    %c0_i32 = arith.constant 0 : i32
    %c0_i32_0 = arith.constant 0 : i32
    %c0_i32_1 = arith.constant 0 : i32
    return %c0_i32, %c0_i32_0 : i32, i32
  }
  func.func @transform_5(%arg0: i32) -> (i32, i32) {
    %c0_i32 = arith.constant 0 : i32
    %c0_i32_0 = arith.constant 0 : i32
    %c0_i32_1 = arith.constant 0 : i32
    return %c0_i32, %c0_i32_0 : i32, i32
  }
  func.func @transform_6(%arg0: i32) -> (i32, i32) {
    %c0_i32 = arith.constant 0 : i32
    %c0_i32_0 = arith.constant 0 : i32
    %c0_i32_1 = arith.constant 0 : i32
    return %c0_i32, %c0_i32_0 : i32, i32
  }
  func.func @transform_7(%arg0: i32) -> (i32, i32) {
    %c0_i32 = arith.constant 0 : i32
    %c0_i32_0 = arith.constant 0 : i32
    return %arg0, %c0_i32 : i32, i32
  }
}

</mosaic_0001>

<bundles_post_ra>
// kernel: tpu_custom_call.1
= control target key start
LH: loop header
LB: loop body
LE: loop exit
PB: predicated region body
PF: predicated region fallthrough
CT: control target
= control target key end

     0   :  { %12 = vsyncpa [#allocation3], 0  ;;  %s404_s24 = smov [#allocation2]   ;;  %s526_s0 = inlined_call_operand.vmem [shape: f32[30,2], index: 0, kind: input, shape index: {}]   ;;  %s527_s1 = inlined_call_operand.vmem [shape: f32[2,64], index: 1, kind: input, shape index: {}]   ;;  %s528_s2 = inlined_call_operand.vmem [shape: f32[1,64], index: 2, kind: input, shape index: {}]   ;;  %s529_s3 = inlined_call_operand.hbm [shape: f32[64,64], index: 3, kind: input, shape index: {}]   ;;  %s530_s4 = inlined_call_operand.vmem [shape: f32[1,64], index: 4, kind: input, shape index: {}]   ;;  %s531_s5 = inlined_call_operand.vmem [shape: f32[2,64], index: 5, kind: input, shape index: {}]   ;;  %s532_s6 = inlined_call_operand.vmem [shape: f32[1,2], index: 6, kind: input, shape index: {}]   ;;  %s533_s7 = inlined_call_operand.vmem [shape: f32[30,2], index: 7, kind: output, shape index: {}]  }
   0x1   :  { %s24_s25 = sshll.u32 %s404_s24, 4  ;;  %s380_s28 = scalar_lea.hbm %s529_s3, 1024  ;;  %s25_s25 = int_to_ptr.vmem [resolvable:$true] %s24_s25 }
   0x2   :  { %p381_p0 = scmp.ne.s32.totalorder %s529_s3, %s380_s28  ;;  %p384_p1 = scmp.lt.u32.totalorder %s380_s28, %s529_s3 }
   0x4   :  { %p386_p2 = pnand %p384_p1, %p381_p0 }
   0x6   :  { %389 = shalt.err (!%p386_p2)
}
   0x7   :  { %s390_s10 = scalar_lea.vmem %s25_s25, 1024  ;;  %p395_p4 = scmp.lt.s32.totalorder %s25_s25, %s25_s25 }
   0x8   :  { %p391_p3 = scmp.ne.s32.totalorder %s25_s25, %s390_s10  ;;  %p396_p5 = scmp.lt.s32.totalorder %s390_s10, %s390_s10 }
   0xa   :  { %p397_p6 = por %p396_p5, %p395_p4 }
   0xc   :  { %p398_p7 = pnand %p397_p6, %p391_p3 }
   0xe   :  { %401 = shalt.err (!%p398_p7)
}
   0xf   :  { %s405_s11 = smov 128   ;;  %s406_s12 = smov 8  }
  0x10   :  { %30 = dma.hbm_to_vmem [thread:$0]  %s529_s3, 1024, %s25_s25, [#allocation3], %s405_s11, %s405_s11, %s406_s12  }
  0x11   :  { %402 = dma.done.wait [#allocation3], 1024  }
  0x12   :  { %403 = vsyncadd [#allocation3], 4294966272  ;;  %v407_v0 = vmov 0   ;;  %v41_v1 = vld [vmem:[%s526_s0 + $0x8] sm:$0xff]  ;;  %v40_v2 = vld [vmem:[%s526_s0] sm:$0xff]  ;;  %v408_v11 = vmov 1  }
  0x13   :  { %377 = vset.pattern.permute.xlu1 %v407_v0  ;;  %376 = vset.pattern.permute.xlu0 %v407_v0  ;;  %v43_v3 = vld [vmem:[%s526_s0 + $0x18] sm:$0xff]  ;;  %v42_v4 = vld [vmem:[%s526_s0 + $0x10] sm:$0xff]  ;;  %v117_v5 = vld [vmem:[#allocation2] sm:$0xff]  ;;  %vm132_vm0 = vcmask 523264   ;;  %vm276_vm1 = vcmask 7168   ;;  %vm292_vm2 = vcmask 15360  }
  0x14   :  { %59 = vperm.xlu1 %377, %v41_v1   ;;  %54 = vperm.xlu0 %376, %v40_v2   ;;  %v118_v6 = vld [vmem:[#allocation2 + $0x8] sm:$0xff]  ;;  %v119_v8 = vld [vmem:[#allocation2 + $0x10] sm:$0xff]  ;;  %v120_v9 = vld [vmem:[#allocation2 + $0x18] sm:$0xff] }
  0x15   :  { %v347_v7 = vpack.c.bf16 %v118_v6, %v117_v5  ;;  %v351_v10 = vpack.c.bf16 %v120_v9, %v119_v8  ;;  %v121_v12 = vld [vmem:[#allocation2 + $0x20] sm:$0xff]  ;;  %v122_v13 = vld [vmem:[#allocation2 + $0x28] sm:$0xff]  ;;  %v123_v15 = vld [vmem:[#allocation2 + $0x30] sm:$0xff] }
  0x16   :  { %v355_v14 = vpack.c.bf16 %v122_v13, %v121_v12  ;;  %v124_v16 = vld [vmem:[#allocation2 + $0x38] sm:$0xff]  ;;  %v303_v20 = vld [vmem:[%s527_s1] ss:$0 sm:$0xff]  ;;  %v304_v26 = vld [vmem:[%s527_s1 + $0x1] ss:$0 sm:$0xff] }
  0x17   :  { %348 = vmatprep.subr.bf16.mxu0 %v347_v7  ;;  %363 = vmatprep.subr.bf16.mxu1 %v347_v7  ;;  %v359_v17 = vpack.c.bf16 %v124_v16, %v123_v15  ;;  %v302_v25 = vld [vmem:[%s528_s2] ss:$0 sm:$0xff]  ;;  %v311_v62 = vld [vmem:[%s531_s5 + $0x1] ss:$0 sm:$0xff] }
  0x18   :  { %69 = vperm.xlu1 %377, %v43_v3   ;;  %64 = vperm.xlu0 %376, %v42_v4   ;;  %v305_v49 = vld [vmem:[%s530_s4] ss:$0 sm:$0xff] }
  0x19   :  { %350 = vmatpush3.bf16.msra.mxu0 %v347_v7  ;;  %367 = vmatpush3.bf16.msra.mxu1 %v347_v7  ;;  %v310_v58 = vld [vmem:[%s531_s5] ss:$0 sm:$0xff] }
  0x1a   :  { %352 = vmatprep.subr.bf16.mxu0 %v351_v10  ;;  %364 = vmatprep.subr.bf16.mxu1 %v351_v10 }
  0x1c   :  { %379 = vset.pattern.permute.xlu1 %v408_v11  ;;  %378 = vset.pattern.permute.xlu0 %v408_v11 }
  0x1d   :  { %94 = vperm.xlu1 %379, %v42_v4   ;;  %86 = vperm.xlu0 %378, %v40_v2  }
  0x1e   :  { %354 = vmatpush3.bf16.msra.mxu0 %v351_v10  ;;  %368 = vmatpush3.bf16.msra.mxu1 %v351_v10 }
  0x1f   :  { %356 = vmatprep.subr.bf16.mxu0 %v355_v14  ;;  %365 = vmatprep.subr.bf16.mxu1 %v355_v14 }
  0x21   :  { %90 = vperm.xlu1 %379, %v41_v1   ;;  %98 = vperm.xlu0 %378, %v43_v3  }
  0x22   :  { %358 = vmatpush3.bf16.msra.mxu0 %v355_v14  ;;  %369 = vmatpush3.bf16.msra.mxu1 %v355_v14 }
  0x23   :  { %360 = vmatprep.subr.bf16.mxu0 %v359_v17  ;;  %366 = vmatprep.subr.bf16.mxu1 %v359_v17 }
  0x26   :  { %362 = vmatpush3.bf16.msra.mxu0 %v359_v17  ;;  %370 = vmatpush3.bf16.msra.mxu1 %v359_v17 }
  0x93   :  { %v60_v18 = vpop.permute.xlu1 %59  ;;  %v55_v19 = vpop.permute.xlu0 %54 }
  0x94   :  { %v76_v23 = vmul.f32 %v303_v20, %v55_v19  ;;  %v77_v27 = vmul.f32 %v303_v20, %v60_v18  ;;  %v312_v18 = vld [vmem:[%s532_s6] ss:$0 sm:$0xff] }
  0x96   :  { %v80_v31 = vadd.f32 %v302_v25, %v76_v23  ;;  %v81_v37 = vadd.f32 %v302_v25, %v77_v27 }
  0x97   :  { %v70_v21 = vpop.permute.xlu1 %69  ;;  %v65_v22 = vpop.permute.xlu0 %64 }
  0x98   :  { %v78_v24 = vmul.f32 %v303_v20, %v65_v22  ;;  %v79_v28 = vmul.f32 %v303_v20, %v70_v21 }
  0x9a   :  { %v82_v32 = vadd.f32 %v302_v25, %v78_v24  ;;  %v83_v38 = vadd.f32 %v302_v25, %v79_v28 }
  0x9c   :  { %v95_v29 = vpop.permute.xlu1 %94  ;;  %v87_v30 = vpop.permute.xlu0 %86 }
  0x9d   :  { %v107_v33 = vmul.f32 %v304_v26, %v95_v29  ;;  %v105_v34 = vmul.f32 %v304_v26, %v87_v30 }
  0x9f   :  { %v109_v35 = vadd.f32 %v105_v34, %v80_v31  ;;  %v111_v36 = vadd.f32 %v107_v33, %v82_v32 }
  0xa0   :  { %v91_v39 = vpop.permute.xlu1 %90  ;;  %v99_v40 = vpop.permute.xlu0 %98 }
  0xa1   :  { %v106_v41 = vmul.f32 %v304_v26, %v91_v39  ;;  %v108_v42 = vmul.f32 %v304_v26, %v99_v40  ;;  %v113_v43 = vmax.f32 %v109_v35, 0.0  ;;  %v115_v44 = vmax.f32 %v111_v36, 0.0 }
  0xa3   :  { %v110_v45 = vadd.f32 %v106_v41, %v81_v37  ;;  %v112_v46 = vadd.f32 %v108_v42, %v83_v38  ;;  %341 = vmatprep.mubr.msk.f32.mxu0 %vm132_vm0, %v113_v43  ;;  %344 = vmatprep.mubr.msk.f32.mxu1 %vm132_vm0, %v115_v44 }
  0xa5   :  { %v114_v47 = vmax.f32 %v110_v45, 0.0  ;;  %v116_v48 = vmax.f32 %v112_v46, 0.0 }
  0xa7   :  { %342 = vmatmul.mubr.msk.f32.vlgmr.msra.gmra.mrb[0].mxu0 %vm132_vm0, %v114_v47  ;;  %345 = vmatmul.mubr.msk.f32.vlgmr.msra.gmra.mrb[0].mxu1 %vm132_vm0, %v116_v48 }
 0x17a   :  { %v343_v50 = vpop.f32.mrb[0].mxu0  ;;  %v346_v51 = vpop.f32.mrb[0].mxu1 }
 0x17b   :  { %v217_v52 = vadd.f32 %v343_v50, %v305_v49  ;;  %v227_v53 = vadd.f32 %v346_v51, %v305_v49  ;;  %v211_v54 = vpop.f32.mrb[1].mxu0  ;;  %v221_v55 = vpop.f32.mrb[1].mxu1 }
 0x17c   :  { %v212_v56 = vadd.f32 %v305_v49, %v211_v54  ;;  %v222_v57 = vadd.f32 %v305_v49, %v221_v55 }
 0x17d   :  { %v231_v59 = vmax.f32 %v217_v52, 0.0  ;;  %v233_v60 = vmax.f32 %v227_v53, 0.0 }
 0x17e   :  { %v232_v61 = vmax.f32 %v222_v57, 0.0  ;;  %v230_v1 = vmax.f32 %v212_v56, 0.0 }
 0x17f   :  { %v240_v63 = vmul.f32 %v310_v58, %v231_v59  ;;  %v242_v0 = vmul.f32 %v310_v58, %v233_v60  ;;  %v261_v4 = vmul.f32 %v311_v62, %v231_v59  ;;  %v263_v12 = vmul.f32 %v311_v62, %v233_v60 }
 0x180   :  { %v241_v5 = vmul.f32 %v310_v58, %v232_v61  ;;  %v239_v8 = vmul.f32 %v310_v58, %v230_v1  ;;  %v260_v9 = vmul.f32 %v311_v62, %v230_v1  ;;  %v262_v13 = vmul.f32 %v311_v62, %v232_v61 }
 0x181   :  { %v246_v2 = vsel %vm132_vm0, %v240_v63, 0.0  ;;  %v252_v3 = vsel %vm132_vm0, %v242_v0, 0.0  ;;  %v267_v6 = vsel %vm132_vm0, %v261_v4, 0.0  ;;  %v273_v14 = vsel %vm132_vm0, %v263_v12, 0.0 }
 0x182   :  { %247 = vadd.xlane.f32.xlu0 %v246_v2  ;;  %253 = vadd.xlane.f32.xlu1 %v252_v3  ;;  %v249_v7 = vsel %vm132_vm0, %v241_v5, 0.0  ;;  %v243_v10 = vsel %vm132_vm0, %v239_v8, 0.0  ;;  %v264_v11 = vsel %vm132_vm0, %v260_v9, 0.0  ;;  %v270_v15 = vsel %vm132_vm0, %v262_v13, 0.0 }
 0x186   :  { %268 = vadd.xlane.f32.xlu1 %v267_v6  ;;  %250 = vadd.xlane.f32.xlu0 %v249_v7 }
 0x18a   :  { %244 = vadd.xlane.f32.xlu1 %v243_v10  ;;  %265 = vadd.xlane.f32.xlu0 %v264_v11 }
 0x18e   :  { %274 = vadd.xlane.f32.xlu1 %v273_v14  ;;  %271 = vadd.xlane.f32.xlu0 %v270_v15 }
 0x20f   :  { %v254_v16 = vpop.xlane.xlu1 %253  ;;  %v248_v17 = vpop.xlane.xlu0 %247 }
 0x213   :  { %v269_v19 = vpop.xlane.xlu1 %268  ;;  %v251_v20 = vpop.xlane.xlu0 %250 }
 0x214   :  { %v278_v21 = vsel %vm276_vm1, %v248_v17, %v269_v19 }
 0x215   :  { %v289_v22 = vadd.f32 %v312_v18, %v278_v21 }
 0x217   :  { %294 = vst.msk [vmem:[%s533_s7 + $0x8] sm:$0xff] %vm292_vm2, %v289_v22  ;;  %v245_v23 = vpop.xlane.xlu1 %244  ;;  %v266_v24 = vpop.xlane.xlu0 %265 }
 0x218   :  { %v277_v25 = vsel %vm276_vm1, %v245_v23, %v266_v24 }
 0x219   :  { %v288_v26 = vadd.f32 %v312_v18, %v277_v25 }
 0x21b   :  { %293 = vst.msk [vmem:[%s533_s7] sm:$0xff] %vm292_vm2, %v288_v26  ;;  %v275_v27 = vpop.xlane.xlu1 %274  ;;  %v272_v28 = vpop.xlane.xlu0 %271 }
 0x21c   :  { %v280_v29 = vsel %vm276_vm1, %v254_v16, %v275_v27  ;;  %v279_v30 = vsel %vm276_vm1, %v251_v20, %v272_v28 }
 0x21d   :  { %v291_v31 = vadd.f32 %v312_v18, %v280_v29  ;;  %v290_v32 = vadd.f32 %v312_v18, %v279_v30 }
 0x21f   :  { %296 = vst.msk [vmem:[%s533_s7 + $0x18] sm:$0xff] %vm292_vm2, %v291_v31  ;;  %295 = vst.msk [vmem:[%s533_s7 + $0x10] sm:$0xff] %vm292_vm2, %v290_v32 }
 0x220   :  { %301 = vsyncpa [#allocation3], 1 }

</bundles_post_ra>
